<compile_context>
chip_gen: v7x
topology: tpu7x:2x2x1
jax: 0.10.0
libtpu: 0.0.40
codegen_flags: <defaults>
</compile_context>

<pallas_src>
import functools

import jax
import jax.numpy as jnp
from jax.experimental import pallas as pl
from jax.experimental.pallas import tpu as pltpu


def _ceil_to(x, m):
    return ((x + m - 1) // m) * m


# ----------------------------------------------------------------------------
# Tiled MXU matmul: bf16 operands, f32 accumulation into the output block.
# Optional fused bias add and per-channel [sum, sum-of-squares] epilogue.
# ----------------------------------------------------------------------------

def _matmul_kernel(*refs, has_bias, has_stats):
    a_ref, b_ref = refs[0], refs[1]
    idx = 2
    bias_ref = None
    if has_bias:
        bias_ref = refs[idx]
        idx += 1
    o_ref = refs[idx]
    idx += 1
    stats_ref = refs[idx] if has_stats else None

    k = pl.program_id(2)

    @pl.when(k == 0)
    def _():
        o_ref[...] = jnp.zeros_like(o_ref)

    o_ref[...] += jnp.dot(a_ref[...], b_ref[...],
                          preferred_element_type=jnp.float32)

    if has_bias or has_stats:
        @pl.when(k == pl.num_programs(2) - 1)
        def _():
            acc = o_ref[...]
            if has_bias:
                acc = acc + bias_ref[...]
                o_ref[...] = acc
            if has_stats:
                stats_ref[0, 0:1, :] = jnp.sum(acc, axis=0, keepdims=True)
                stats_ref[0, 1:2, :] = jnp.sum(acc * acc, axis=0, keepdims=True)


def matmul(a, b, bias=None, compute_stats=False):
    """(M, K) @ (K, N) -> f32 (M, N) [, (2, N) per-column sum / sum-of-squares]."""
    M, K = a.shape
    K2, N = b.shape
    assert K == K2
    tm = min(256, _ceil_to(M, 8))
    tn = min(512, _ceil_to(N, 128))
    tk = min(512, _ceil_to(K, 128))
    Mp, Np, Kp = _ceil_to(M, tm), _ceil_to(N, tn), _ceil_to(K, tk)
    nm, nn, nk = Mp // tm, Np // tn, Kp // tk

    a_p = jnp.pad(a.astype(jnp.bfloat16), ((0, Mp - M), (0, Kp - K)))
    b_p = jnp.pad(b.astype(jnp.bfloat16), ((0, Kp - K), (0, Np - N)))

    inputs = [a_p, b_p]
    in_specs = [pl.BlockSpec((tm, tk), lambda i, j, k: (i, k)),
                pl.BlockSpec((tk, tn), lambda i, j, k: (k, j))]
    if bias is not None:
        inputs.append(jnp.pad(bias.astype(jnp.float32),
                              (0, Np - N)).reshape(1, Np))
        in_specs.append(pl.BlockSpec((1, tn), lambda i, j, k: (0, j)))

    out_shape = [jax.ShapeDtypeStruct((Mp, Np), jnp.float32)]
    out_specs = [pl.BlockSpec((tm, tn), lambda i, j, k: (i, j))]
    if compute_stats:
        out_shape.append(jax.ShapeDtypeStruct((nm, 2, Np), jnp.float32))
        out_specs.append(pl.BlockSpec((1, 2, tn), lambda i, j, k: (i, 0, j)))

    outs = pl.pallas_call(
        functools.partial(_matmul_kernel, has_bias=bias is not None,
                          has_stats=compute_stats),
        out_shape=out_shape,
        grid_spec=pltpu.PrefetchScalarGridSpec(
            num_scalar_prefetch=0,
            grid=(nm, nn, nk),
            in_specs=in_specs,
            out_specs=out_specs),
        compiler_params=pltpu.CompilerParams(
            dimension_semantics=("parallel", "parallel", "arbitrary")),
    )(*inputs)

    out = outs[0][:M, :N]
    if compute_stats:
        return out, outs[1].sum(axis=0)[:, :N]
    return out


# ----------------------------------------------------------------------------
# Fused convolution (no im2col): per-output-row grid, taps reduced in-kernel.
# Also emits per-row BatchNorm partial statistics (sum, sum-of-squares).
# ----------------------------------------------------------------------------

def _conv_row_kernel(*refs, kh, kw, stride, wo):
    x_rows = refs[:kh]          # kh refs, each (1, 1, Wp, Cin) bf16
    w_ref = refs[kh]            # (kh, kw, Cin, Cout) bf16 (VMEM resident)
    o_ref = refs[kh + 1]        # (1, 1, wo, Cout) f32
    st_ref = refs[kh + 2]       # (1, 1, 2, Cout) f32

    cout = w_ref.shape[-1]
    acc = jnp.zeros((wo, cout), jnp.float32)
    for i in range(kh):
        for j in range(kw):
            if stride == 1:
                a = x_rows[i][0, 0, pl.ds(j, wo), :]
            else:
                a = x_rows[i][0, 0, pl.ds(j, wo, stride=stride), :]
            acc = acc + jnp.dot(a, w_ref[i, j, :, :],
                                preferred_element_type=jnp.float32)
    o_ref[0, 0, :, :] = acc
    st_ref[0, 0, 0:1, :] = jnp.sum(acc, axis=0, keepdims=True)
    st_ref[0, 0, 1:2, :] = jnp.sum(acc * acc, axis=0, keepdims=True)


def _conv2d_fused(x, w_taps, stride, pad=1):
    """x: (N,H,W,Cin) bf16; w_taps: (KH,KW,Cin,Cout) bf16 -> f32 out + (2,Cout)."""
    N, H, W, Cin = x.shape
    KH, KW, Cin2, Cout = w_taps.shape
    assert Cin == Cin2
    Ho = (H + 2 * pad - KH) // stride + 1
    Wo = (W + 2 * pad - KW) // stride + 1
    Wp = max(W + 2 * pad, (KW - 1) + stride * (Wo - 1) + 1)
    xp = jnp.pad(x.astype(jnp.bfloat16),
                 ((0, 0), (pad, pad), (pad, Wp - W - pad), (0, 0)))

    in_specs = [
        pl.BlockSpec((1, 1, Wp, Cin),
                     (lambda n, ho, i=i, s=stride: (n, ho * s + i, 0, 0)))
        for i in range(KH)
    ]
    in_specs.append(pl.BlockSpec((KH, KW, Cin, Cout),
                                 lambda n, ho: (0, 0, 0, 0)))

    outs = pl.pallas_call(
        functools.partial(_conv_row_kernel, kh=KH, kw=KW, stride=stride, wo=Wo),
        out_shape=[jax.ShapeDtypeStruct((N, Ho, Wo, Cout), jnp.float32),
                   jax.ShapeDtypeStruct((N, Ho, 2, Cout), jnp.float32)],
        grid_spec=pltpu.PrefetchScalarGridSpec(
            num_scalar_prefetch=0,
            grid=(N, Ho),
            in_specs=in_specs,
            out_specs=[pl.BlockSpec((1, 1, Wo, Cout), lambda n, ho: (n, ho, 0, 0)),
                       pl.BlockSpec((1, 1, 2, Cout), lambda n, ho: (n, ho, 0, 0))]),
        compiler_params=pltpu.CompilerParams(
            dimension_semantics=("parallel", "parallel")),
    )(*([xp] * KH), w_taps.astype(jnp.bfloat16))

    y, st = outs[0], outs[1]
    return y, st.sum(axis=(0, 1))                      # (N,Ho,Wo,Cout), (2,Cout)


def _im2col(x, kh, kw, stride, pad):
    N, H, W, C = x.shape
    xp = jnp.pad(x, ((0, 0), (pad, pad), (pad, pad), (0, 0)))
    Ho = (H + 2 * pad - kh) // stride + 1
    Wo = (W + 2 * pad - kw) // stride + 1
    cols = [xp[:, i:i + stride * Ho:stride, j:j + stride * Wo:stride, :]
            for i in range(kh) for j in range(kw)]
    patches = jnp.stack(cols, axis=3).reshape(N * Ho * Wo, kh * kw * C)
    return patches, Ho, Wo


def _conv2d_im2col(x, w_mat, kh, kw, stride, pad):
    """im2col + tiled matmul path (7x7 stem conv and safety fallback)."""
    N, H, W, Cin = x.shape
    Cout = w_mat.shape[1]
    patches, Ho, Wo = _im2col(x.astype(jnp.bfloat16), kh, kw, stride, pad)
    y2, stats = matmul(patches, w_mat, compute_stats=True)
    return y2.reshape(N, Ho, Wo, Cout), stats


_FUSED_CONV_OK = {1: True, 2: True}


def conv3x3(x, w_taps, stride):
    """3x3 conv, padding 1, no bias (bias is cancelled by training-mode BN)."""
    if _FUSED_CONV_OK[stride]:
        try:
            return _conv2d_fused(x, w_taps, stride)
        except Exception:   # strided-read lowering unavailable -> im2col path
            _FUSED_CONV_OK[stride] = False
    kh, kw, cin, cout = w_taps.shape
    return _conv2d_im2col(x, jnp.reshape(w_taps, (kh * kw * cin, cout)),
                          kh, kw, stride, 1)


# ----------------------------------------------------------------------------
# BatchNorm apply (+ optional residual + ReLU): tiled elementwise kernel.
# ----------------------------------------------------------------------------

def _affine_kernel(*refs, apply_relu, has_res):
    x_ref, scale_ref, shift_ref = refs[0], refs[1], refs[2]
    res_ref = refs[3] if has_res else None
    o_ref = refs[4] if has_res else refs[3]
    y = x_ref[...] * scale_ref[...] + shift_ref[...]
    if has_res:
        y = y + res_ref[...].astype(jnp.float32)
    if apply_relu:
        y = jnp.maximum(y, 0.0)
    o_ref[...] = y.astype(o_ref.dtype)


def affine_act(x, scale, shift, residual=None, apply_relu=True,
               out_dtype=jnp.bfloat16):
    M, C = x.shape
    tm = min(1024, _ceil_to(M, 8))
    Mp = _ceil_to(M, tm)
    x_p = jnp.pad(x.astype(jnp.float32), ((0, Mp - M), (0, 0)))
    inputs = [x_p, scale.astype(jnp.float32).reshape(1, C),
              shift.astype(jnp.float32).reshape(1, C)]
    in_specs = [pl.BlockSpec((tm, C), lambda i: (i, 0)),
                pl.BlockSpec((1, C), lambda i: (0, 0)),
                pl.BlockSpec((1, C), lambda i: (0, 0))]
    if residual is not None:
        inputs.append(jnp.pad(residual, ((0, Mp - M), (0, 0))))
        in_specs.append(pl.BlockSpec((tm, C), lambda i: (i, 0)))

    out = pl.pallas_call(
        functools.partial(_affine_kernel, apply_relu=apply_relu,
                          has_res=residual is not None),
        out_shape=jax.ShapeDtypeStruct((Mp, C), out_dtype),
        grid_spec=pltpu.PrefetchScalarGridSpec(
            num_scalar_prefetch=0,
            grid=(Mp // tm,),
            in_specs=in_specs,
            out_specs=pl.BlockSpec((tm, C), lambda i: (i, 0))),
        compiler_params=pltpu.CompilerParams(
            dimension_semantics=("parallel",)),
    )(*inputs)
    return out[:M]


def bn_act(y, stats, gamma, beta, residual=None, apply_relu=True, eps=1e-5):
    """Training-mode BatchNorm2d (batch statistics) + optional residual + ReLU.
    `stats` = per-channel [sum, sum-of-squares] emitted by the conv kernel.
    # TODO(synk): running-statistics updates (training side effect) not modeled.
    """
    N, Ho, Wo, C = y.shape
    count = N * Ho * Wo
    mean = stats[0] / count
    var = jnp.maximum(stats[1] / count - mean * mean, 0.0)   # biased, like torch
    scale = gamma * jax.lax.rsqrt(var + eps)
    shift = beta - mean * scale
    res2 = None if residual is None else residual.reshape(count, C)
    out2 = affine_act(y.reshape(count, C), scale, shift, res2, apply_relu)
    return out2.reshape(N, Ho, Wo, C)


# ----------------------------------------------------------------------------
# MaxPool 3x3 / stride 2 / pad 1 and global (adaptive 1x1) max pool.
# ----------------------------------------------------------------------------

def _maxpool_row_kernel(*refs, k, stride, wo):
    rows = refs[:k]
    o_ref = refs[k]
    acc = None
    for i in range(k):
        for j in range(k):
            tap = rows[i][0, 0, pl.ds(j, wo, stride=stride), :]
            acc = tap if acc is None else jnp.maximum(acc, tap)
    o_ref[0, 0, :, :] = acc


def _maxpool_fused(x, k, stride, pad):
    N, H, W, C = x.shape
    Ho = (H + 2 * pad - k) // stride + 1
    Wo = (W + 2 * pad - k) // stride + 1
    Wp = max(W + 2 * pad, (k - 1) + stride * (Wo - 1) + 1)
    neg = float(jnp.finfo(x.dtype).min)
    xp = jnp.pad(x, ((0, 0), (pad, pad), (pad, Wp - W - pad), (0, 0)),
                 constant_values=neg)
    in_specs = [
        pl.BlockSpec((1, 1, Wp, C),
                     (lambda n, ho, i=i, s=stride: (n, ho * s + i, 0, 0)))
        for i in range(k)
    ]
    return pl.pallas_call(
        functools.partial(_maxpool_row_kernel, k=k, stride=stride, wo=Wo),
        out_shape=jax.ShapeDtypeStruct((N, Ho, Wo, C), x.dtype),
        grid_spec=pltpu.PrefetchScalarGridSpec(
            num_scalar_prefetch=0,
            grid=(N, Ho),
            in_specs=in_specs,
            out_specs=pl.BlockSpec((1, 1, Wo, C), lambda n, ho: (n, ho, 0, 0))),
        compiler_params=pltpu.CompilerParams(
            dimension_semantics=("parallel", "parallel")),
    )(*([xp] * k))


def _tapmax_kernel(x_ref, o_ref):
    y = x_ref[0]
    for t in range(1, x_ref.shape[0]):
        y = jnp.maximum(y, x_ref[t])
    o_ref[...] = y


def _maxpool_stacked(x, k, stride, pad):
    N, H, W, C = x.shape
    neg = float(jnp.finfo(x.dtype).min)
    xp = jnp.pad(x, ((0, 0), (pad, pad), (pad, pad), (0, 0)),
                 constant_values=neg)
    Ho = (H + 2 * pad - k) // stride + 1
    Wo = (W + 2 * pad - k) // stride + 1
    taps = [xp[:, i:i + stride * Ho:stride, j:j + stride * Wo:stride, :]
            .reshape(N * Ho * Wo, C) for i in range(k) for j in range(k)]
    stacked = jnp.stack(taps, axis=0)
    M = N * Ho * Wo
    tm = min(1024, _ceil_to(M, 8))
    Mp = _ceil_to(M, tm)
    stacked = jnp.pad(stacked, ((0, 0), (0, Mp - M), (0, 0)),
                      constant_values=neg)
    out = pl.pallas_call(
        _tapmax_kernel,
        out_shape=jax.ShapeDtypeStruct((Mp, C), x.dtype),
        grid_spec=pltpu.PrefetchScalarGridSpec(
            num_scalar_prefetch=0,
            grid=(Mp // tm,),
            in_specs=[pl.BlockSpec((k * k, tm, C), lambda i: (0, i, 0))],
            out_specs=pl.BlockSpec((tm, C), lambda i: (i, 0))),
        compiler_params=pltpu.CompilerParams(
            dimension_semantics=("parallel",)),
    )(stacked)
    return out[:M].reshape(N, Ho, Wo, C)


_FUSED_POOL_OK = [True]


def maxpool2d(x, k=3, stride=2, pad=1):
    if _FUSED_POOL_OK[0]:
        try:
            return _maxpool_fused(x, k, stride, pad)
        except Exception:
            _FUSED_POOL_OK[0] = False
    return _maxpool_stacked(x, k, stride, pad)


def _gmax_kernel(x_ref, o_ref):
    k = pl.program_id(0)
    m = jnp.max(x_ref[...].astype(jnp.float32), axis=1)   # (N, C)

    @pl.when(k == 0)
    def _():
        o_ref[...] = m

    @pl.when(k > 0)
    def _():
        o_ref[...] = jnp.maximum(o_ref[...], m)


def global_max_pool(x):
    """AdaptiveMaxPool2d((1,1)): (N,H,W,C) -> (N,C) f32."""
    N, H, W, C = x.shape
    HW = H * W
    t = min(512, _ceil_to(HW, 8))
    HWp = _ceil_to(HW, t)
    neg = float(jnp.finfo(x.dtype).min)
    x2 = jnp.pad(x.reshape(N, HW, C), ((0, 0), (0, HWp - HW), (0, 0)),
                 constant_values=neg)
    return pl.pallas_call(
        _gmax_kernel,
        out_shape=jax.ShapeDtypeStruct((N, C), jnp.float32),
        grid_spec=pltpu.PrefetchScalarGridSpec(
            num_scalar_prefetch=0,
            grid=(HWp // t,),
            in_specs=[pl.BlockSpec((N, t, C), lambda k: (0, k, 0))],
            out_specs=pl.BlockSpec((N, C), lambda k: (0, 0))),
        compiler_params=pltpu.CompilerParams(
            dimension_semantics=("arbitrary",)),
    )(x2)


# ----------------------------------------------------------------------------
# Parameters (weights pre-transposed to TPU-friendly layout, bf16) and forward.
# ----------------------------------------------------------------------------

def _conv_weight(key, k, cin, cout):
    fan_in = cin * k * k
    w = jax.random.normal(key, (k, k, cin, cout), jnp.float32) / jnp.sqrt(fan_in)
    return w.astype(jnp.bfloat16)           # (KH, KW, Cin, Cout) tap layout


def _init_bn(c):
    return jnp.ones((c,), jnp.float32), jnp.zeros((c,), jnp.float32)


def init_block(key, cin, cout, stride):
    k1, k2, k3 = jax.random.split(key, 3)
    g1, be1 = _init_bn(cout)
    g2, be2 = _init_bn(cout)
    ds = None
    if stride != 1 or cin != cout:
        gd, bed = _init_bn(cout)
        ds = {"w": _conv_weight(k3, 3, cin, cout), "g": gd, "be": bed}
    return {"w1": _conv_weight(k1, 3, cin, cout), "g1": g1, "be1": be1,
            "w2": _conv_weight(k2, 3, cout, cout), "g2": g2, "be2": be2,
            "ds": ds, "stride": stride}


def init_resnet(key, num_classes):
    keys = jax.random.split(key, 7)
    g0, be0 = _init_bn(64)
    # 7x7 stem conv weights stored pre-flattened for the im2col matmul path.
    w0 = _conv_weight(keys[0], 7, 3, 64).reshape(7 * 7 * 3, 64)
    return {
        "initial": {"w_mat": w0, "g": g0, "be": be0},
        "block1": init_block(keys[1], 64, 128, 2),
        "block2": init_block(keys[2], 128, 256, 2),
        "block3": init_block(keys[3], 256, 512, 2),
        "block4": init_block(keys[4], 512, 512, 1),
        "block5": init_block(keys[5], 512, 512, 1),
        "linear": {
            "w": (jax.random.normal(keys[6], (512, num_classes), jnp.float32)
                  / jnp.sqrt(512.0)).astype(jnp.bfloat16),
            "b": jnp.zeros((num_classes,), jnp.float32),
        },
    }


def conv_block(x, p):
    y1, s1 = conv3x3(x, p["w1"], p["stride"])
    h = bn_act(y1, s1, p["g1"], p["be1"], apply_relu=True)
    y2, s2 = conv3x3(h, p["w2"], 1)
    if p["ds"] is not None:
        d = p["ds"]
        yd, sd = conv3x3(x, d["w"], p["stride"])
        idn = bn_act(yd, sd, d["g"], d["be"], apply_relu=False)
    else:
        idn = x
    # relu(bn2(conv2(.)) + identity) fused into one affine kernel call.
    return bn_act(y2, s2, p["g2"], p["be2"], residual=idn, apply_relu=True)


def resnet_forward(x_nchw, params):
    x = jnp.transpose(x_nchw, (0, 2, 3, 1)).astype(jnp.bfloat16)  # NCHW -> NHWC
    p0 = params["initial"]
    y, st = _conv2d_im2col(x, p0["w_mat"], 7, 7, 2, 3)            # 7x7 / s2 / p3
    x = bn_act(y, st, p0["g"], p0["be"], apply_relu=True)
    x = maxpool2d(x, 3, 2, 1)
    for name in ("block1", "block2", "block3", "block4", "block5"):
        x = conv_block(x, params[name])
    feat = global_max_pool(x)                                     # (N, 512) f32
    logits = matmul(feat, params["linear"]["w"], bias=params["linear"]["b"])
    return logits


# ----------------------------------------------------------------------------

if __name__ == "__main__":
    num_classes = 10
    key = jax.random.PRNGKey(0)
    k_params, k_input = jax.random.split(key)

    params = init_resnet(k_params, num_classes)
    x = jax.random.normal(k_input, (2, 3, 32, 32), jnp.float32)   # NCHW input

    logits = resnet_forward(x, params)
    logits = jax.block_until_ready(logits)

    assert logits.shape == (2, num_classes), logits.shape
    assert bool(jnp.all(jnp.isfinite(logits)))
    print("KERNEL_OK")
</pallas_src>

<mosaic_0001>
module attributes {stable_mosaic.version = 11 : i64} {
  func.func @_matmul_kernel(%arg0: i32, %arg1: i32, %arg2: i32, %arg3: memref<256x256xbf16, #tpu.memory_space<vmem>>, %arg4: memref<256x128xbf16, #tpu.memory_space<vmem>>, %arg5: memref<256x128xf32, #tpu.memory_space<vmem>>, %arg6: memref<1x2x128xf32, #tpu.memory_space<vmem>>) attributes {dimension_semantics = [#tpu.dimension_semantics<parallel>, #tpu.dimension_semantics<parallel>, #tpu.dimension_semantics<arbitrary>], iteration_bounds = array<i64: 2, 1, 1>, scalar_prefetch = 0 : i64, scratch_operands = 0 : i64, tpu.core_type = #tpu.core_type<tc>, window_params = [{transform_indices = @transform_0, window_bounds = array<i64: 256, 256>}, {transform_indices = @transform_1, window_bounds = array<i64: 256, 128>}, {transform_indices = @transform_2, window_bounds = array<i64: 256, 128>}, {transform_indices = @transform_3, window_bounds = array<i64: 1, 2, 128>}]} {
    %c0_i32 = arith.constant 0 : i32
    %0 = arith.cmpi eq, %arg2, %c0_i32 : i32
    %1 = arith.extui %0 : i1 to i32
    %c0_i32_0 = arith.constant 0 : i32
    %2 = arith.cmpi ne, %1, %c0_i32_0 : i32
    scf.if %2 {
      %cst_10 = arith.constant 0.000000e+00 : f32
      %12 = vector.broadcast %cst_10 : f32 to vector<256x128xf32>
      %c0_11 = arith.constant 0 : index
      %c0_12 = arith.constant 0 : index
      %13 = vector.load %arg5[%c0_11, %c0_12] : memref<256x128xf32, #tpu.memory_space<vmem>>, vector<256x128xf32>
      tpu.vector_store %arg5[%c0_11, %c0_12], %12 {strides = array<i32>} : memref<256x128xf32, #tpu.memory_space<vmem>>, vector<256x128xf32>,
    } else {
    }
    %c0 = arith.constant 0 : index
    %c0_1 = arith.constant 0 : index
    %3 = vector.load %arg5[%c0, %c0_1] : memref<256x128xf32, #tpu.memory_space<vmem>>, vector<256x128xf32>
    %c0_2 = arith.constant 0 : index
    %c0_3 = arith.constant 0 : index
    %4 = vector.load %arg3[%c0_2, %c0_3] : memref<256x256xbf16, #tpu.memory_space<vmem>>, vector<256x256xbf16>
    %c0_4 = arith.constant 0 : index
    %c0_5 = arith.constant 0 : index
    %5 = vector.load %arg4[%c0_4, %c0_5] : memref<256x128xbf16, #tpu.memory_space<vmem>>, vector<256x128xbf16>
    %cst = arith.constant dense<0.000000e+00> : vector<256x128xf32>
    %6 = tpu.matmul %4, %5, %cst {dimension_numbers = #tpu.dot_dimension_numbers<[1], [0], [0], [1], [0, 0, 1, 1], [], []>} : vector<256x256xbf16>, vector<256x128xbf16>, vector<256x128xf32> -> vector<256x128xf32>
    %7 = arith.addf %3, %6 : vector<256x128xf32>
    %c0_6 = arith.constant 0 : index
    %c0_7 = arith.constant 0 : index
    %8 = vector.load %arg5[%c0_6, %c0_7] : memref<256x128xf32, #tpu.memory_space<vmem>>, vector<256x128xf32>
    tpu.vector_store %arg5[%c0_6, %c0_7], %7 {strides = array<i32>} : memref<256x128xf32, #tpu.memory_space<vmem>>, vector<256x128xf32>,
    %c0_i32_8 = arith.constant 0 : i32
    %9 = arith.cmpi eq, %arg2, %c0_i32_8 : i32
    %10 = arith.extui %9 : i1 to i32
    %c0_i32_9 = arith.constant 0 : i32
    %11 = arith.cmpi ne, %10, %c0_i32_9 : i32
    scf.if %11 {
      %c0_10 = arith.constant 0 : index
      %c0_11 = arith.constant 0 : index
      %12 = vector.load %arg5[%c0_10, %c0_11] : memref<256x128xf32, #tpu.memory_space<vmem>>, vector<256x128xf32>
      %cst_12 = arith.constant dense<0.000000e+00> : vector<128xf32>
      %13 = vector.multi_reduction <add>, %12, %cst_12 [0] : vector<256x128xf32> to vector<128xf32>
      %14 = vector.shape_cast %13 : vector<128xf32> to vector<1x128xf32>
      %c0_13 = arith.constant 0 : index
      %c0_14 = arith.constant 0 : index
      %c0_15 = arith.constant 0 : index
      %15 = vector.load %arg6[%c0_13, %c0_14, %c0_15] : memref<1x2x128xf32, #tpu.memory_space<vmem>>, vector<1x1x128xf32>
      %16 = vector.shape_cast %15 : vector<1x1x128xf32> to vector<1x128xf32>
      %17 = vector.shape_cast %14 : vector<1x128xf32> to vector<1x1x128xf32>
      tpu.vector_store %arg6[%c0_13, %c0_14, %c0_15], %17 {strides = array<i32>} : memref<1x2x128xf32, #tpu.memory_space<vmem>>, vector<1x1x128xf32>,
      %18 = arith.mulf %12, %12 : vector<256x128xf32>
      %cst_16 = arith.constant dense<0.000000e+00> : vector<128xf32>
      %19 = vector.multi_reduction <add>, %18, %cst_16 [0] : vector<256x128xf32> to vector<128xf32>
      %20 = vector.shape_cast %19 : vector<128xf32> to vector<1x128xf32>
      %c0_17 = arith.constant 0 : index
      %c1 = arith.constant 1 : index
      %c0_18 = arith.constant 0 : index
      %21 = vector.load %arg6[%c0_17, %c1, %c0_18] : memref<1x2x128xf32, #tpu.memory_space<vmem>>, vector<1x1x128xf32>
      %22 = vector.shape_cast %21 : vector<1x1x128xf32> to vector<1x128xf32>
      %23 = vector.shape_cast %20 : vector<1x128xf32> to vector<1x1x128xf32>
      tpu.vector_store %arg6[%c0_17, %c1, %c0_18], %23 {strides = array<i32>} : memref<1x2x128xf32, #tpu.memory_space<vmem>>, vector<1x1x128xf32>,
    } else {
    }
    return
  }
  func.func @transform_0(%arg0: i32, %arg1: i32, %arg2: i32) -> (i32, i32) {
    %c0_i32 = arith.constant 0 : i32
    return %arg0, %arg2 : i32, i32
  }
  func.func @transform_1(%arg0: i32, %arg1: i32, %arg2: i32) -> (i32, i32) {
    %c0_i32 = arith.constant 0 : i32
    return %arg2, %arg1 : i32, i32
  }
  func.func @transform_2(%arg0: i32, %arg1: i32, %arg2: i32) -> (i32, i32) {
    %c0_i32 = arith.constant 0 : i32
    return %arg0, %arg1 : i32, i32
  }
  func.func @transform_3(%arg0: i32, %arg1: i32, %arg2: i32) -> (i32, i32, i32) {
    %c0_i32 = arith.constant 0 : i32
    %c0_i32_0 = arith.constant 0 : i32
    return %arg0, %c0_i32, %arg1 : i32, i32, i32
  }
}

</mosaic_0001>

<bundles_post_ra>
// kernel: tpu_custom_call.1
= control target key start
LH: loop header
LB: loop body
LE: loop exit
PB: predicated region body
PF: predicated region fallthrough
CT: control target
= control target key end

     0   :  { %9 = vsyncpa [#allocation3], 0  ;;  %s2106_s0 = inlined_call_operand.hbm [shape: bf16[512,256], index: 0, kind: input, shape index: {}]   ;;  %s2107_s1 = inlined_call_operand.hbm [shape: bf16[256,128], index: 1, kind: input, shape index: {}]   ;;  %s2108_s2 = inlined_call_operand.hbm [shape: f32[512,128], index: 2, kind: output, shape index: {0}]   ;;  %s2109_s3 = inlined_call_operand.hbm [shape: f32[2,2,128], index: 3, kind: output, shape index: {1}]  }
   0x1   :  { %11 = vsyncpa [#allocation3 + $0x1], 0 }
   0x2   :  { %12 = vsyncpa [#allocation6], 0 }
   0x3   :  { %13 = vsyncpa [#allocation4], 0 }
   0x4   :  { %15 = vsyncpa [#allocation4 + $0x1], 0 }
   0x5   :  { %16 = vsyncpa [#allocation9], 0 }
   0x6   :  { %18 = vsyncpa [#allocation9 + $0x1], 0  ;;  %s1742_s12 = smov 0   ;;  %s1744_s13 = smov 0  }
   0x7   :  { %s1746_s14 = smov 0   ;;  %s1748_s15 = smov 0  }
   0x8   :  { %s1750_s16 = smov 0   ;;  %s1752_s17 = smov 0  }
   0x9 LB: > { %s1185_s18 = sadd.s32 4294967295, %s1710_s17   ;;  %s1186_s19 = sadd.s32 4294967294, %s1710_s17   ;;  %s1710_s17 = sphi %s1752_s17, %s24_s17   ;;  %s1706_s16 = sphi %s1750_s16, %s2133_s16   ;;  %s1702_s15 = sphi %s1748_s15, %s2132_s15   ;;  %s1698_s14 = sphi %s1746_s14, %s2131_s14   ;;  %s1694_s13 = sphi %s1744_s13, %s2130_s13   ;;  %s1690_s12 = sphi %s1742_s12, %s2129_s12  }
   0xa   : > { %p65_p0 = scmp.ne.s32.totalorder %s1694_s13, %s1690_s12  ;;  %p1776_p1 = scmp.eq.s32.totalorder %s1185_s18, 0 }
   0xb   : > { %p1780_p2 = scmp.eq.s32.totalorder %s1185_s18, 1  ;;  %p125_p3 = scmp.eq.s32.totalorder %s1186_s19, 1 }
   0xc   : > { %s2114_s20 = scalar_select %p1776_p1, 1, 0 }
   0xd   : > { %s2115_s21 = scalar_select %p1780_p2, 1, 0 }
   0xe   : > { %p1786_p4 = por %p1776_p1, %p65_p0  ;;  %p1187_p5 = scmp.ge.s32.totalorder %s1710_s17, 1 }
   0xf   : > { %p1791_p6 = por %p125_p3, %p65_p0  ;;  %p160_p7 = scmp.lt.s32.totalorder %s1710_s17, 3 }
  0x10   : > { %s2116_s22 = scalar_select %p1786_p4, 1, 0 }
  0x11   : > { %s2117_s23 = scalar_select %p1791_p6, 1, 0 }
  0x12   : > { %p1796_p8 = pnand %p1187_p5, %p160_p7  ;;  %s1712_s25 = smov [#allocation5]  }
  0x13   : > { %s176_s26 = sshll.u32 %s1712_s25, 4  ;;  %s43_s28 = sadd.s32 1, %s1706_s16  ;;  %s177_s26 = int_to_ptr.vmem [resolvable:$true] %s176_s26 }
  0x14   : > { %s2118_s24 = scalar_select %p1796_p8, 1, 0 }
  0x15   : > { %p1395_p9 = pneg %p1796_p8  ;;  %s1534_s4 = scalar_lea.hbm %s2107_s1, 2048 }
  0x16   : > { %p1535_p12 = scmp.ne.s32.totalorder %s2107_s1, %s1534_s4  ;;  %p1541_p5 = scmp.lt.u32.totalorder %s1534_s4, %s2107_s1 }
  0x17   : > { %p1805_p11 = pnand %p1395_p9, %p1776_p1 }
  0x19   : > { %p1536_p13 = pneg %p1805_p11 }
  0x1b   : > { %p1537_p0 = pnand %p1536_p13, %p1535_p12 }
  0x1d   : > { %p1538_p3 = pneg %p1537_p0 }
  0x1f   : > { %p1543_p7 = pnand %p1541_p5, %p1538_p3 }
  0x21   : > { %1546 = shalt.err (!%p1543_p7)
}
  0x22   : > { %s1547_s9 = scalar_lea.vmem %s177_s26, 2048  ;;  %p1555_p1 = scmp.lt.s32.totalorder %s177_s26, %s177_s26 }
  0x23   : > { %p1548_p9 = scmp.ne.s32.totalorder %s177_s26, %s1547_s9  ;;  %p1556_p4 = scmp.lt.s32.totalorder %s1547_s9, %s1547_s9 }
  0x25   : > { %p1550_p10 = pnand %p1548_p9, %p1536_p13  ;;  %p1557_p8 = por %p1556_p4, %p1555_p1 }
  0x27   : > { %p1551_p6 = pneg %p1550_p10 }
  0x29   : > { %p1558_p2 = pnand %p1557_p8, %p1551_p6 }
  0x2b   : > { %1561 = shalt.err (!%p1558_p2)
}
  0x2c   : > { %s1713_s10 = smov 64   ;;  %s1714_s11 = smov 4  }
  0x2d   : > { %1398 = dma.hbm_to_vmem [thread:$0]  (!%p1805_p11), %s2107_s1, 2048, %s177_s26, [#allocation6], %s1713_s10, %s1713_s10, %s1714_s11  }
  0x2e   : > { %p45_p1 = scmp.ge.s32.totalorder %s43_s28, 2  ;;  %s52_s25 = sadd.s32 1, %s1698_s14 }
  0x2f   : > { %p59_p2 = scmp.ne.s32.totalorder %s1698_s14, %s1694_s13  ;;  %p60_p4 = scmp.eq.s32.totalorder %s1710_s17, 0 }
  0x30   : > { %s2135_s28 = smov (%p45_p1, %s43_s28), 0  ;;  %p2121_p8 = scmp.ne.s32.totalorder %s2115_s21, 0 }
  0x31   : > { %p1832_p6 = por %p60_p4, %p59_p2  ;;  %s47_s27 = ssub.s32 %s1706_s16, %s2135_s28 }
  0x32   : > { %p1838_p10 = por %p2121_p8, %p59_p2  ;;  %p1411_p12 = scmp.lt.s32.totalorder %s1710_s17, 2 }
  0x33   : > { %p50_p11 = scmp.eq.s32.totalorder %s47_s27, 0  ;;  %s190_s26 = sand.u32 1, %s1698_s14  }
  0x34   : > { %s1190_s4 = sshll.u32 %s190_s26, 8  ;;  %s1255_s6 = sshll.u32 %s1706_s16, 12 }
  0x35   : > { %s1847_s5 = scalar_select %p50_p11, %s1698_s14, %s52_s25  }
  0x36   : > { %s1853_s9 = scalar_lea.hbm %s2106_s0, %s1255_s6  ;;  %s194_s21 = scalar_lea.vmem [#allocation2], %s1190_s4 }
  0x37   : > { %s204_s10 = sshll.u32 %s194_s21, 4  ;;  %p1859_p13 = pnand %p1411_p12, %p1832_p6  ;;  %s1855_s10 = int_to_ptr.vmem [resolvable:$true] %s204_s10 }
  0x38   : > { %s1863_s18 = scalar_lea.sflag [#allocation3], %s190_s26  ;;  %s1562_s19 = scalar_lea.hbm %s1853_s9, 4096 }
  0x39   : > { %p1563_p0 = scmp.ne.s32.totalorder %s1853_s9, %s1562_s19  ;;  %p1564_p3 = pneg %p1859_p13 }
  0x3a   : > { %s1567_s29 = scalar_lea.hbm %s2106_s0, 8192  ;;  %p1568_p9 = scmp.lt.u32.totalorder %s1853_s9, %s2106_s0 }
  0x3b   : > { %p1565_p5 = pnand %p1564_p3, %p1563_p0  ;;  %p1569_p1 = scmp.lt.u32.totalorder %s1567_s29, %s1562_s19 }
  0x3c   : > { %p1571_p4 = scmp.lt.u32.totalorder %s1562_s19, %s1853_s9 }
  0x3d   : > { %p1566_p7 = pneg %p1565_p5  ;;  %p1570_p2 = por %p1569_p1, %p1568_p9 }
  0x3f   : > { %p1572_p6 = por %p1571_p4, %p1570_p2 }
  0x41   : > { %p1573_p8 = pnand %p1572_p6, %p1566_p7 }
  0x43   : > { %1576 = shalt.err (!%p1573_p8)
}
  0x44   : > { %s1577_s26 = scalar_lea.vmem %s1855_s10, 4096  ;;  %s1715_s7 = smov [#allocation2]  }
  0x45   : > { %p1578_p12 = scmp.ne.s32.totalorder %s1855_s10, %s1577_s26  ;;  %s1582_s8 = sshll.u32 %s1715_s7, 4  ;;  %s1583_s8 = int_to_ptr.vmem [resolvable:$false] %s1582_s8 }
  0x46   : > { %s1584_s21 = scalar_lea.vmem %s1583_s8, 8192  ;;  %p1585_p5 = scmp.lt.s32.totalorder %s1855_s10, %s1583_s8 }
  0x47   : > { %p1580_p11 = pnand %p1578_p12, %p1564_p3  ;;  %p1586_p9 = scmp.lt.s32.totalorder %s1584_s21, %s1577_s26 }
  0x49   : > { %p1581_p0 = pneg %p1580_p11  ;;  %p1587_p1 = por %p1586_p9, %p1585_p5 }
  0x4b   : > { %p1588_p2 = pnand %p1587_p1, %p1581_p0 }
  0x4d   : > { %1591 = shalt.err (!%p1588_p2)
}
  0x4e   : > { %s1716_s19 = smov 128   ;;  %s1717_s25 = smov 8  }
  0x4f   : > { %1402 = dma.hbm_to_vmem [thread:$0]  (!%p1859_p13), %s1853_s9, 4096, %s1855_s10, %s1863_s18, %s1716_s19, %s1716_s19, %s1717_s25  }
  0x50   : > { %p2124_p3 = scmp.ne.s32.totalorder %s2118_s24, 0 }
  0x51   : > { %s1894_s27 = sand.u32 (!%p2124_p3), 1, %s1694_s13   ;;  %p2125_p7 = scmp.ne.s32.totalorder (!%p2124_p3), %s2116_s22, 0 }
  0x52   : > { %216 = sbr.rel (%p2124_p3) target bundleno = 472 (0x1d8), region = 28  ;;  %s1195_s29 = sshll.u32 (!%p2124_p3), %s1894_s27, 8 }
  0x53   : > { %s219_s4 = scalar_lea.sflag (!%p2124_p3), [#allocation3], %s1894_s27  ;;  %s1900_s6 = scalar_lea.vmem (!%p2124_p3), [#allocation2], %s1195_s29 }
  0x59   : > { %1673 = dma.done.wait (%p2125_p7), %s219_s4, 4096  }
  0x5a   : > { %1675 = vsyncadd (%p2125_p7), %s219_s4, 4294963200  ;;  %p2126_p13 = scmp.ne.s32.totalorder %s2114_s20, 0 }
  0x5c   : > { %1677 = dma.done.wait (%p2126_p13), [#allocation6], 2048  }
  0x5d   : > { %1679 = vsyncadd (%p2126_p13), [#allocation6], 4294965248  ;;  %v1470_v0 = vld [vmem:[#allocation5 + $0x40] sm:$0xff]   ;;  %v1472_v2 = vld [vmem:[#allocation5 + $0x48] sm:$0xff]   ;;  %s1948_s20 = scalar_lea.vmem [#allocation7], %s1195_s29  ;;  %s1256_s22 = sshll.u32 %s1702_s15, 12 }
  0x5e   : > { %v1471_v1 = vld [vmem:[#allocation5] sm:$0xff]   ;;  %1257 = vmatprep.subr.bf16.mxu0 %v1470_v0  ;;  %1369 = vmatprep.subr.bf16.mxu1 %v1470_v0  ;;  %v1473_v3 = vld [vmem:[#allocation5 + $0x8] sm:$0xff]   ;;  %v1474_v4 = vld [vmem:[#allocation5 + $0x50] sm:$0xff]   ;;  %s1035_s24 = sshll.u32 %s1948_s20, 4  ;;  %s1995_s11 = scalar_lea.hbm %s2108_s2, %s1256_s22  ;;  %s1997_s24 = int_to_ptr.vmem [resolvable:$true] %s1035_s24 }
  0x5f   : > { %1258 = vmatpush3.bf16.msra.mxu0 %v1471_v1  ;;  %1377 = vmatpush3.bf16.msra.mxu1 %v1471_v1  ;;  %v1475_v5 = vld [vmem:[#allocation5 + $0x10] sm:$0xff]   ;;  %v1476_v6 = vld [vmem:[#allocation5 + $0x58] sm:$0xff]   ;;  %v1478_v8 = vld [vmem:[#allocation5 + $0x60] sm:$0xff]   ;;  %s1016_s18 = scalar_lea.sflag [#allocation4], %s1894_s27  ;;  %s1592_s26 = scalar_lea.vmem %s1997_s24, 4096 }
  0x60   : > { %1259 = vmatprep.subr.bf16.mxu0 %v1472_v2  ;;  %1370 = vmatprep.subr.bf16.mxu1 %v1472_v2  ;;  %v1477_v7 = vld [vmem:[#allocation5 + $0x18] sm:$0xff]   ;;  %v1479_v9 = vld [vmem:[#allocation5 + $0x20] sm:$0xff]   ;;  %v1480_v10 = vld [vmem:[#allocation5 + $0x68] sm:$0xff]   ;;  %p1593_p4 = scmp.ne.s32.totalorder %s1997_s24, %s1592_s26  ;;  %s1718_s7 = smov [#allocation7]  }
  0x61   : > { %v1488_v11 = vld [vmem:[%s1900_s6 + $0x4] ss:$8 sps:$4 sm:$0xff]   ;;  %v1482_v13 = vld [vmem:[#allocation5 + $0x70] sm:$0xff]   ;;  %v1484_v16 = vld [vmem:[#allocation5 + $0x78] sm:$0xff]   ;;  %s1596_s8 = sshll.u32 %s1718_s7, 4  ;;  %s1597_s8 = int_to_ptr.vmem [resolvable:$false] %s1596_s8 }
  0x62   : > { %v1481_v12 = vld [vmem:[#allocation5 + $0x28] sm:$0xff]   ;;  %679 = vmatprep.mubr.bf16.mxu0 %v1488_v11  ;;  %v1483_v15 = vld [vmem:[#allocation5 + $0x30] sm:$0xff]   ;;  %v1485_v17 = vld [vmem:[#allocation5 + $0x38] sm:$0xff]   ;;  %p1594_p6 = pnand %p1593_p4, %p1838_p10  ;;  %s1598_s21 = scalar_lea.vmem %s1597_s8, 8192 }
  0x63   : > { %1260 = vmatpush3.bf16.msra.mxu0 %v1473_v3  ;;  %1378 = vmatpush3.bf16.msra.mxu1 %v1473_v3  ;;  %v1500_v14 = vld [vmem:[%s1900_s6 + $0x84] ss:$8 sps:$4 sm:$0xff]   ;;  %v1486_v18 = vld [vmem:[%s1900_s6] ss:$8 sps:$4 sm:$0xff]   ;;  %v1489_v19 = vld [vmem:[%s1900_s6 + $0x14] ss:$8 sps:$4 sm:$0xff]   ;;  %p1599_p12 = scmp.lt.s32.totalorder %s1997_s24, %s1597_s8  ;;  %p1600_p11 = scmp.lt.s32.totalorder %s1598_s21, %s1592_s26 }
  0x64   : > { %1261 = vmatprep.subr.bf16.mxu0 %v1474_v4  ;;  %1371 = vmatprep.subr.bf16.mxu1 %v1474_v4  ;;  %v1498_v20 = vld [vmem:[%s1900_s6 + $0x80] ss:$8 sps:$4 sm:$0xff]   ;;  %v1504_v21 = vld [vmem:[%s1900_s6 + $0x94] ss:$8 sps:$4 sm:$0xff]   ;;  %v1491_v22 = vld [vmem:[%s1900_s6 + $0x10] ss:$8 sps:$4 sm:$0xff]   ;;  %p1595_p8 = pneg %p1594_p6 }
  0x65   : > { %743 = vmatprep.mubr.bf16.mxu1 %v1500_v14  ;;  %v1492_v23 = vld [vmem:[%s1900_s6 + $0x24] ss:$8 sps:$4 sm:$0xff]   ;;  %v1506_v24 = vld [vmem:[%s1900_s6 + $0x90] ss:$8 sps:$4 sm:$0xff]   ;;  %v1494_v26 = vld [vmem:[%s1900_s6 + $0x20] ss:$8 sps:$4 sm:$0xff]   ;;  %p1601_p0 = por %p1600_p11, %p1599_p12 }
  0x66   : > { %v1510_v25 = vld [vmem:[%s1900_s6 + $0xa4] ss:$8 sps:$4 sm:$0xff]   ;;  %v1495_v27 = vld [vmem:[%s1900_s6 + $0x34] ss:$8 sps:$4 sm:$0xff]   ;;  %v1512_v28 = vld [vmem:[%s1900_s6 + $0xa0] ss:$8 sps:$4 sm:$0xff]  }
  0x67   : > { %1262 = vmatpush3.bf16.msra.mxu0 %v1475_v5  ;;  %1379 = vmatpush3.bf16.msra.mxu1 %v1475_v5  ;;  %v1516_v29 = vld [vmem:[%s1900_s6 + $0xb4] ss:$8 sps:$4 sm:$0xff]   ;;  %v1497_v30 = vld [vmem:[%s1900_s6 + $0x30] ss:$8 sps:$4 sm:$0xff]   ;;  %v1501_v31 = vld [vmem:[%s1900_s6 + $0x44] ss:$8 sps:$4 sm:$0xff]   ;;  %p1602_p5 = pnand %p1601_p0, %p1595_p8 }
  0x68   : > { %1263 = vmatprep.subr.bf16.mxu0 %v1476_v6  ;;  %1372 = vmatprep.subr.bf16.mxu1 %v1476_v6  ;;  %v1518_v32 = vld [vmem:[%s1900_s6 + $0xb0] ss:$8 sps:$4 sm:$0xff]   ;;  %v1522_v33 = vld [vmem:[%s1900_s6 + $0xc4] ss:$8 sps:$4 sm:$0xff]   ;;  %v1503_v34 = vld [vmem:[%s1900_s6 + $0x40] ss:$8 sps:$4 sm:$0xff]  }
  0x69   : > { %v1507_v35 = vld [vmem:[%s1900_s6 + $0x54] ss:$8 sps:$4 sm:$0xff]   ;;  %v1524_v36 = vld [vmem:[%s1900_s6 + $0xc0] ss:$8 sps:$4 sm:$0xff]   ;;  %v1509_v38 = vld [vmem:[%s1900_s6 + $0x50] ss:$8 sps:$4 sm:$0xff]  }
  0x6a   : > { %v1525_v37 = vld [vmem:[%s1900_s6 + $0xd4] ss:$8 sps:$4 sm:$0xff]   ;;  %v1513_v39 = vld [vmem:[%s1900_s6 + $0x64] ss:$8 sps:$4 sm:$0xff]   ;;  %v1527_v40 = vld [vmem:[%s1900_s6 + $0xd0] ss:$8 sps:$4 sm:$0xff]  }
  0x6b   : > { %1264 = vmatpush3.bf16.msra.mxu0 %v1477_v7  ;;  %1380 = vmatpush3.bf16.msra.mxu1 %v1477_v7  ;;  %v1528_v41 = vld [vmem:[%s1900_s6 + $0xe4] ss:$8 sps:$4 sm:$0xff]   ;;  %v1515_v42 = vld [vmem:[%s1900_s6 + $0x60] ss:$8 sps:$4 sm:$0xff]   ;;  %v1519_v43 = vld [vmem:[%s1900_s6 + $0x74] ss:$8 sps:$4 sm:$0xff]  }
  0x6c   : > { %1265 = vmatprep.subr.bf16.mxu0 %v1478_v8  ;;  %1373 = vmatprep.subr.bf16.mxu1 %v1478_v8  ;;  %v1530_v44 = vld [vmem:[%s1900_s6 + $0xe0] ss:$8 sps:$4 sm:$0xff]   ;;  %v1531_v45 = vld [vmem:[%s1900_s6 + $0xf4] ss:$8 sps:$4 sm:$0xff]   ;;  %v1521_v46 = vld [vmem:[%s1900_s6 + $0x70] ss:$8 sps:$4 sm:$0xff]  }
  0x6d   : > { %v1533_v47 = vld [vmem:[%s1900_s6 + $0xf0] ss:$8 sps:$4 sm:$0xff]  }
  0x6f   : > { %1266 = vmatpush3.bf16.msra.mxu0 %v1479_v9  ;;  %1381 = vmatpush3.bf16.msra.mxu1 %v1479_v9 }
  0x70   : > { %1267 = vmatprep.subr.bf16.mxu0 %v1480_v10  ;;  %1374 = vmatprep.subr.bf16.mxu1 %v1480_v10 }
  0x73   : > { %1268 = vmatpush3.bf16.msra.mxu0 %v1481_v12  ;;  %1382 = vmatpush3.bf16.msra.mxu1 %v1481_v12 }
  0x74   : > { %1269 = vmatprep.subr.bf16.mxu0 %v1482_v13  ;;  %1375 = vmatprep.subr.bf16.mxu1 %v1482_v13 }
  0x77   : > { %1270 = vmatpush3.bf16.msra.mxu0 %v1483_v15  ;;  %1383 = vmatpush3.bf16.msra.mxu1 %v1483_v15 }
  0x78   : > { %1271 = vmatprep.subr.bf16.mxu0 %v1484_v16  ;;  %1376 = vmatprep.subr.bf16.mxu1 %v1484_v16 }
  0x7b   : > { %1272 = vmatpush3.bf16.msra.mxu0 %v1485_v17  ;;  %1384 = vmatpush3.bf16.msra.mxu1 %v1485_v17 }
  0x7e   : > { %680 = vmatmul.mubr.bf16.vlgmr.msra.gmra.mrb[0].mxu0 %v1486_v18  ;;  %744 = vmatmul.mubr.bf16.vlgmr.msra.gmra.mrb[0].mxu1 %v1498_v20 }
  0x7f   : > { %687 = vmatprep.mubr.bf16.mxu0 %v1489_v19  ;;  %751 = vmatprep.mubr.bf16.mxu1 %v1504_v21 }
  0x86   : > { %688 = vmatmul.mubr.bf16.gmra.mrb[4].mxu0 %v1491_v22  ;;  %752 = vmatmul.mubr.bf16.gmra.mrb[4].mxu1 %v1506_v24 }
  0x87   : > { %695 = vmatprep.mubr.bf16.mxu0 %v1492_v23  ;;  %759 = vmatprep.mubr.bf16.mxu1 %v1510_v25 }
  0x8e   : > { %696 = vmatmul.mubr.bf16.gmra.mrb[8].mxu0 %v1494_v26  ;;  %760 = vmatmul.mubr.bf16.gmra.mrb[8].mxu1 %v1512_v28 }
  0x8f   : > { %703 = vmatprep.mubr.bf16.mxu0 %v1495_v27  ;;  %767 = vmatprep.mubr.bf16.mxu1 %v1516_v29 }
  0x96   : > { %704 = vmatmul.mubr.bf16.gmra.mrb[12].mxu0 %v1497_v30  ;;  %768 = vmatmul.mubr.bf16.gmra.mrb[12].mxu1 %v1518_v32 }
  0x97   : > { %711 = vmatprep.mubr.bf16.mxu0 %v1501_v31  ;;  %775 = vmatprep.mubr.bf16.mxu1 %v1522_v33 }
  0x9e   : > { %712 = vmatmul.mubr.bf16.gmra.mrb[16].mxu0 %v1503_v34  ;;  %776 = vmatmul.mubr.bf16.gmra.mrb[16].mxu1 %v1524_v36 }
  0x9f   : > { %719 = vmatprep.mubr.bf16.mxu0 %v1507_v35  ;;  %783 = vmatprep.mubr.bf16.mxu1 %v1525_v37 }
  0xa6   : > { %720 = vmatmul.mubr.bf16.gmra.mrb[20].mxu0 %v1509_v38  ;;  %784 = vmatmul.mubr.bf16.gmra.mrb[20].mxu1 %v1527_v40 }
  0xa7   : > { %727 = vmatprep.mubr.bf16.mxu0 %v1513_v39  ;;  %791 = vmatprep.mubr.bf16.mxu1 %v1528_v41 }
  0xae   : > { %728 = vmatmul.mubr.bf16.gmra.mrb[24].mxu0 %v1515_v42  ;;  %792 = vmatmul.mubr.bf16.gmra.mrb[24].mxu1 %v1530_v44 }
  0xaf   : > { %735 = vmatprep.mubr.bf16.mxu0 %v1519_v43  ;;  %799 = vmatprep.mubr.bf16.mxu1 %v1531_v45 }
  0xb6   : > { %736 = vmatmul.mubr.bf16.gmra.mrb[28].mxu0 %v1521_v46  ;;  %800 = vmatmul.mubr.bf16.gmra.mrb[28].mxu1 %v1533_v47 }
 0x151   : > { %v1273_v48 = vpop.f32.mrb[0].mxu0  ;;  %v1321_v50 = vpop.f32.mrb[0].mxu1 }
 0x152   : > { %v1274_v49 = vpop.f32.mrb[1].mxu0  ;;  %v1322_v53 = vpop.f32.mrb[1].mxu1 }
 0x153   : > { %v1275_v51 = vadd.f32 %v1274_v49, %v1273_v48  ;;  %v1276_v52 = vpop.f32.mrb[2].mxu0  ;;  %v1942_v55 = vadd.f32 %v1322_v53, %v1321_v50  ;;  %v1324_v56 = vpop.f32.mrb[2].mxu1 }
 0x154   : > { %v1277_v54 = vpop.f32.mrb[3].mxu0  ;;  %v1325_v58 = vpop.f32.mrb[3].mxu1 }
 0x155   : > { %v1278_v57 = vadd.f32 %v1277_v54, %v1276_v52  ;;  %v1944_v59 = vadd.f32 %v1325_v58, %v1324_v56  ;;  %840 = vst [vmem:[%s1948_s20] sm:$0xff] %v1275_v51  ;;  %856 = vst [vmem:[%s1948_s20 + $0x80] sm:$0xff] %v1942_v55  ;;  %v945_v60 = vmul.f32 %v1275_v51, %v1275_v51 }
 0x157   : > { %841 = vst [vmem:[%s1948_s20 + $0x8] sm:$0xff] %v1278_v57  ;;  %v907_v61 = vadd.f32 %v1278_v57, %v1275_v51  ;;  %v946_v62 = vmul.f32 %v1278_v57, %v1278_v57  ;;  %857 = vst [vmem:[%s1948_s20 + $0x88] sm:$0xff] %v1944_v59 }
 0x159   : > { %v1279_v63 = vpop.f32.mrb[4].mxu0  ;;  %v1327_v1 = vpop.f32.mrb[4].mxu1  ;;  %v977_v2 = vadd.f32 %v946_v62, %v945_v60 }
 0x15a   : > { %v1280_v0 = vpop.f32.mrb[5].mxu0  ;;  %v1328_v5 = vpop.f32.mrb[5].mxu1 }
 0x15b   : > { %v1281_v3 = vadd.f32 %v1280_v0, %v1279_v63  ;;  %v1282_v4 = vpop.f32.mrb[6].mxu0  ;;  %v1956_v7 = vadd.f32 %v1328_v5, %v1327_v1  ;;  %v1330_v8 = vpop.f32.mrb[6].mxu1 }
 0x15c   : > { %v1283_v6 = vpop.f32.mrb[7].mxu0  ;;  %v1331_v10 = vpop.f32.mrb[7].mxu1 }
 0x15d   : > { %v1284_v9 = vadd.f32 %v1283_v6, %v1282_v4  ;;  %v1958_v11 = vadd.f32 %v1331_v10, %v1330_v8  ;;  %842 = vst [vmem:[%s1948_s20 + $0x10] sm:$0xff] %v1281_v3  ;;  %v908_v12 = vadd.f32 %v1281_v3, %v907_v61  ;;  %v947_v13 = vmul.f32 %v1281_v3, %v1281_v3 }
 0x15e   : > { %858 = vst [vmem:[%s1948_s20 + $0x90] sm:$0xff] %v1956_v7 }
 0x15f   : > { %v978_v14 = vadd.f32 %v977_v2, %v947_v13  ;;  %843 = vst [vmem:[%s1948_s20 + $0x18] sm:$0xff] %v1284_v9  ;;  %v909_v15 = vadd.f32 %v1284_v9, %v908_v12  ;;  %v948_v16 = vmul.f32 %v1284_v9, %v1284_v9  ;;  %859 = vst [vmem:[%s1948_s20 + $0x98] sm:$0xff] %v1958_v11 }
 0x161   : > { %v1285_v17 = vpop.f32.mrb[8].mxu0  ;;  %v1333_v19 = vpop.f32.mrb[8].mxu1  ;;  %v979_v20 = vadd.f32 %v978_v14, %v948_v16 }
 0x162   : > { %v1286_v18 = vpop.f32.mrb[9].mxu0  ;;  %v1334_v23 = vpop.f32.mrb[9].mxu1 }
 0x163   : > { %v1287_v21 = vadd.f32 %v1286_v18, %v1285_v17  ;;  %v1288_v22 = vpop.f32.mrb[10].mxu0  ;;  %v1966_v25 = vadd.f32 %v1334_v23, %v1333_v19  ;;  %v1336_v26 = vpop.f32.mrb[10].mxu1 }
 0x164   : > { %v1289_v24 = vpop.f32.mrb[11].mxu0  ;;  %v1337_v28 = vpop.f32.mrb[11].mxu1 }
 0x165   : > { %v1290_v27 = vadd.f32 %v1289_v24, %v1288_v22  ;;  %v1338_v29 = vadd.f32 %v1337_v28, %v1336_v26  ;;  %844 = vst [vmem:[%s1948_s20 + $0x20] sm:$0xff] %v1287_v21  ;;  %v910_v30 = vadd.f32 %v1287_v21, %v909_v15  ;;  %v949_v31 = vmul.f32 %v1287_v21, %v1287_v21 }
 0x166   : > { %860 = vst [vmem:[%s1948_s20 + $0xa0] sm:$0xff] %v1966_v25 }
 0x167   : > { %v980_v32 = vadd.f32 %v979_v20, %v949_v31  ;;  %845 = vst [vmem:[%s1948_s20 + $0x28] sm:$0xff] %v1290_v27  ;;  %v911_v33 = vadd.f32 %v1290_v27, %v910_v30  ;;  %v950_v34 = vmul.f32 %v1290_v27, %v1290_v27  ;;  %861 = vst [vmem:[%s1948_s20 + $0xa8] sm:$0xff] %v1338_v29 }
 0x169   : > { %v1291_v35 = vpop.f32.mrb[12].mxu0  ;;  %v1339_v37 = vpop.f32.mrb[12].mxu1  ;;  %v981_v38 = vadd.f32 %v980_v32, %v950_v34 }
 0x16a   : > { %v1292_v36 = vpop.f32.mrb[13].mxu0  ;;  %v1340_v41 = vpop.f32.mrb[13].mxu1 }
 0x16b   : > { %v1293_v39 = vadd.f32 %v1292_v36, %v1291_v35  ;;  %v1294_v40 = vpop.f32.mrb[14].mxu0  ;;  %v1341_v43 = vadd.f32 %v1340_v41, %v1339_v37  ;;  %v1342_v44 = vpop.f32.mrb[14].mxu1 }
 0x16c   : > { %v1295_v42 = vpop.f32.mrb[15].mxu0  ;;  %v1343_v46 = vpop.f32.mrb[15].mxu1 }
 0x16d   : > { %v1296_v45 = vadd.f32 %v1295_v42, %v1294_v40  ;;  %v1344_v47 = vadd.f32 %v1343_v46, %v1342_v44  ;;  %846 = vst [vmem:[%s1948_s20 + $0x30] sm:$0xff] %v1293_v39  ;;  %v912_v48 = vadd.f32 %v1293_v39, %v911_v33  ;;  %v951_v49 = vmul.f32 %v1293_v39, %v1293_v39 }
 0x16e   : > { %862 = vst [vmem:[%s1948_s20 + $0xb0] sm:$0xff] %v1341_v43 }
 0x16f   : > { %v982_v50 = vadd.f32 %v981_v38, %v951_v49  ;;  %847 = vst [vmem:[%s1948_s20 + $0x38] sm:$0xff] %v1296_v45  ;;  %v913_v51 = vadd.f32 %v1296_v45, %v912_v48  ;;  %v952_v52 = vmul.f32 %v1296_v45, %v1296_v45  ;;  %863 = vst [vmem:[%s1948_s20 + $0xb8] sm:$0xff] %v1344_v47 }
 0x171   : > { %v1297_v53 = vpop.f32.mrb[16].mxu0  ;;  %v1345_v56 = vpop.f32.mrb[16].mxu1  ;;  %v983_v57 = vadd.f32 %v982_v50, %v952_v52 }
 0x172   : > { %v1298_v54 = vpop.f32.mrb[17].mxu0  ;;  %v1346_v61 = vpop.f32.mrb[17].mxu1 }
 0x173   : > { %v1299_v58 = vadd.f32 %v1298_v54, %v1297_v53  ;;  %v1300_v60 = vpop.f32.mrb[18].mxu0  ;;  %v1347_v63 = vadd.f32 %v1346_v61, %v1345_v56  ;;  %v1348_v0 = vpop.f32.mrb[18].mxu1 }
 0x174   : > { %v1301_v62 = vpop.f32.mrb[19].mxu0  ;;  %v1349_v2 = vpop.f32.mrb[19].mxu1 }
 0x175   : > { %v1302_v1 = vadd.f32 %v1301_v62, %v1300_v60  ;;  %v1350_v3 = vadd.f32 %v1349_v2, %v1348_v0  ;;  %848 = vst [vmem:[%s1948_s20 + $0x40] sm:$0xff] %v1299_v58  ;;  %v914_v4 = vadd.f32 %v1299_v58, %v913_v51  ;;  %v953_v5 = vmul.f32 %v1299_v58, %v1299_v58 }
 0x176   : > { %864 = vst [vmem:[%s1948_s20 + $0xc0] sm:$0xff] %v1347_v63 }
 0x177   : > { %v984_v6 = vadd.f32 %v983_v57, %v953_v5  ;;  %849 = vst [vmem:[%s1948_s20 + $0x48] sm:$0xff] %v1302_v1  ;;  %v915_v8 = vadd.f32 %v1302_v1, %v914_v4  ;;  %v954_v9 = vmul.f32 %v1302_v1, %v1302_v1  ;;  %865 = vst [vmem:[%s1948_s20 + $0xc8] sm:$0xff] %v1350_v3 }
 0x178   : > { %v961_v4 = vmul.f32 %v1942_v55, %v1942_v55 }
 0x179   : > { %v1303_v10 = vpop.f32.mrb[20].mxu0  ;;  %v1351_v13 = vpop.f32.mrb[20].mxu1  ;;  %v985_v14 = vadd.f32 %v984_v6, %v954_v9 }
 0x17a   : > { %v1304_v12 = vpop.f32.mrb[21].mxu0  ;;  %v1352_v17 = vpop.f32.mrb[21].mxu1 }
 0x17b   : > { %v1305_v15 = vadd.f32 %v1304_v12, %v1303_v10  ;;  %v1306_v16 = vpop.f32.mrb[22].mxu0  ;;  %v1353_v19 = vadd.f32 %v1352_v17, %v1351_v13  ;;  %v1354_v20 = vpop.f32.mrb[22].mxu1 }
 0x17c   : > { %v1307_v18 = vpop.f32.mrb[23].mxu0  ;;  %v1355_v22 = vpop.f32.mrb[23].mxu1 }
 0x17d   : > { %v1308_v21 = vadd.f32 %v1307_v18, %v1306_v16  ;;  %v1356_v23 = vadd.f32 %v1355_v22, %v1354_v20  ;;  %850 = vst [vmem:[%s1948_s20 + $0x50] sm:$0xff] %v1305_v15  ;;  %v916_v24 = vadd.f32 %v1305_v15, %v915_v8  ;;  %v955_v26 = vmul.f32 %v1305_v15, %v1305_v15 }
 0x17e   : > { %866 = vst [vmem:[%s1948_s20 + $0xd0] sm:$0xff] %v1353_v19 }
 0x17f   : > { %v986_v27 = vadd.f32 %v985_v14, %v955_v26  ;;  %851 = vst [vmem:[%s1948_s20 + $0x58] sm:$0xff] %v1308_v21  ;;  %v917_v28 = vadd.f32 %v1308_v21, %v916_v24  ;;  %v956_v29 = vmul.f32 %v1308_v21, %v1308_v21  ;;  %867 = vst [vmem:[%s1948_s20 + $0xd8] sm:$0xff] %v1356_v23 }
 0x181   : > { %v1309_v30 = vpop.f32.mrb[24].mxu0  ;;  %v1357_v32 = vpop.f32.mrb[24].mxu1  ;;  %v987_v33 = vadd.f32 %v986_v27, %v956_v29 }
 0x182   : > { %v1310_v31 = vpop.f32.mrb[25].mxu0  ;;  %v1358_v36 = vpop.f32.mrb[25].mxu1 }
 0x183   : > { %v1311_v34 = vadd.f32 %v1310_v31, %v1309_v30  ;;  %v1312_v35 = vpop.f32.mrb[26].mxu0  ;;  %v1359_v38 = vadd.f32 %v1358_v36, %v1357_v32  ;;  %v1360_v39 = vpop.f32.mrb[26].mxu1 }
 0x184   : > { %v1313_v37 = vpop.f32.mrb[27].mxu0  ;;  %v1361_v41 = vpop.f32.mrb[27].mxu1 }
 0x185   : > { %v1314_v40 = vadd.f32 %v1313_v37, %v1312_v35  ;;  %v1362_v42 = vadd.f32 %v1361_v41, %v1360_v39  ;;  %852 = vst [vmem:[%s1948_s20 + $0x60] sm:$0xff] %v1311_v34  ;;  %v918_v43 = vadd.f32 %v1311_v34, %v917_v28  ;;  %v957_v44 = vmul.f32 %v1311_v34, %v1311_v34 }
 0x186   : > { %868 = vst [vmem:[%s1948_s20 + $0xe0] sm:$0xff] %v1359_v38 }
 0x187   : > { %v988_v45 = vadd.f32 %v987_v33, %v957_v44  ;;  %853 = vst [vmem:[%s1948_s20 + $0x68] sm:$0xff] %v1314_v40  ;;  %v919_v46 = vadd.f32 %v1314_v40, %v918_v43  ;;  %v958_v47 = vmul.f32 %v1314_v40, %v1314_v40  ;;  %869 = vst [vmem:[%s1948_s20 + $0xe8] sm:$0xff] %v1362_v42 }
 0x189   : > { %v1315_v48 = vpop.f32.mrb[28].mxu0  ;;  %v1363_v50 = vpop.f32.mrb[28].mxu1  ;;  %v989_v51 = vadd.f32 %v988_v45, %v958_v47 }
 0x18a   : > { %v1316_v49 = vpop.f32.mrb[29].mxu0  ;;  %v1364_v54 = vpop.f32.mrb[29].mxu1 }
 0x18b   : > { %v1317_v52 = vadd.f32 %v1316_v49, %v1315_v48  ;;  %v1318_v53 = vpop.f32.mrb[30].mxu0  ;;  %v1365_v57 = vadd.f32 %v1364_v54, %v1363_v50  ;;  %v1366_v58 = vpop.f32.mrb[30].mxu1 }
 0x18c   : > { %v1319_v56 = vpop.f32.mrb[31].mxu0  ;;  %v1367_v61 = vpop.f32.mrb[31].mxu1 }
 0x18d   : > { %v1320_v60 = vadd.f32 %v1319_v56, %v1318_v53  ;;  %v1368_v62 = vadd.f32 %v1367_v61, %v1366_v58  ;;  %854 = vst [vmem:[%s1948_s20 + $0x70] sm:$0xff] %v1317_v52  ;;  %v920_v63 = vadd.f32 %v1317_v52, %v919_v46  ;;  %v959_v0 = vmul.f32 %v1317_v52, %v1317_v52 }
 0x18e   : > { %870 = vst [vmem:[%s1948_s20 + $0xf0] sm:$0xff] %v1365_v57 }
 0x18f   : > { %v990_v1 = vadd.f32 %v989_v51, %v959_v0  ;;  %855 = vst [vmem:[%s1948_s20 + $0x78] sm:$0xff] %v1320_v60  ;;  %v921_v2 = vadd.f32 %v1320_v60, %v920_v63  ;;  %v960_v3 = vmul.f32 %v1320_v60, %v1320_v60  ;;  %871 = vst [vmem:[%s1948_s20 + $0xf8] sm:$0xff] %v1368_v62 }
 0x191   : > { %v922_v5 = vadd.f32 %v1942_v55, %v921_v2  ;;  %v991_v6 = vadd.f32 %v990_v1, %v960_v3 }
 0x192   : > { %1605 = shalt.err (!%p1602_p5)
}
 0x193   : > { %s1606_s19 = scalar_lea.hbm %s1995_s11, 4096  ;;  %s1610_s4 = scalar_lea.hbm %s2108_s2, 8192 }
 0x194   : > { %p1607_p9 = scmp.ne.s32.totalorder %s1995_s11, %s1606_s19  ;;  %p1611_p3 = scmp.lt.u32.totalorder %s1995_s11, %s2108_s2 }
 0x195   : > { %p1612_p7 = scmp.lt.u32.totalorder %s1610_s4, %s1606_s19  ;;  %p1614_p4 = scmp.lt.u32.totalorder %s1606_s19, %s1995_s11 }
 0x196   : > { %p1608_p1 = pnand %p1607_p9, %p1838_p10 }
 0x197   : > { %p1613_p13 = por %p1612_p7, %p1611_p3 }
 0x198   : > { %p1609_p2 = pneg %p1608_p1 }
 0x199   : > { %p1615_p6 = por %p1614_p4, %p1613_p13 }
 0x19b   : > { %p1616_p8 = pnand %p1615_p6, %p1609_p2 }
 0x19d   : > { %1619 = shalt.err (!%p1616_p8)
}
 0x19e   : > { %s1719_s9 = smov 128   ;;  %s1720_s10 = smov 8   ;;  %v962_v55 = vmul.f32 %v1944_v59, %v1944_v59  ;;  %v923_v8 = vadd.f32 %v1944_v59, %v922_v5  ;;  %v992_v9 = vadd.f32 %v991_v6, %v961_v4  ;;  %v963_v10 = vmul.f32 %v1956_v7, %v1956_v7  ;;  %v896_v17 = vld [vmem:[%s1948_s20 + $0xa8] sm:$0xff]  ;;  %v897_v20 = vld [vmem:[%s1948_s20 + $0xb0] sm:$0xff]  ;;  %v898_v23 = vld [vmem:[%s1948_s20 + $0xb8] sm:$0xff] }
 0x19f   : > { %1391 = dma.vmem_to_hbm [thread:$0]  (%p1838_p10), %s1997_s24, 4096, %s1995_s11, %s1016_s18, %s1719_s9, %s1719_s9, %s1720_s10   ;;  %v964_v14 = vmul.f32 %v1958_v11, %v1958_v11  ;;  %v965_v59 = vmul.f32 %v1966_v25, %v1966_v25  ;;  %v967_v26 = vmul.f32 %v897_v20, %v897_v20  ;;  %v968_v29 = vmul.f32 %v898_v23, %v898_v23 }
 0x1a0   : > { %v924_v12 = vadd.f32 %v1956_v7, %v923_v8  ;;  %v993_v13 = vadd.f32 %v992_v9, %v962_v55  ;;  %v966_v7 = vmul.f32 %v896_v17, %v896_v17  ;;  %v900_v31 = vld [vmem:[%s1948_s20 + $0xc8] sm:$0xff]  ;;  %v901_v34 = vld [vmem:[%s1948_s20 + $0xd0] sm:$0xff]  ;;  %v902_v38 = vld [vmem:[%s1948_s20 + $0xd8] sm:$0xff]  ;;  %s1198_s24 = sshll.u32 %s1894_s27, 1  ;;  %s1021_s21 = scalar_lea.sflag [#allocation9], %s1894_s27 }
 0x1a1   : > { %v970_v36 = vmul.f32 %v900_v31, %v900_v31  ;;  %v971_v40 = vmul.f32 %v901_v34, %v901_v34  ;;  %v903_v42 = vld [vmem:[%s1948_s20 + $0xe0] sm:$0xff]  ;;  %v972_v44 = vmul.f32 %v902_v38, %v902_v38  ;;  %v904_v46 = vld [vmem:[%s1948_s20 + $0xe8] sm:$0xff]  ;;  %v905_v47 = vld [vmem:[%s1948_s20 + $0xf0] sm:$0xff]  ;;  %s253_s11 = scalar_lea.vmem [#allocation8], %s1198_s24 }
 0x1a2   : > { %v925_v15 = vadd.f32 %v1958_v11, %v924_v12  ;;  %v994_v16 = vadd.f32 %v993_v13, %v963_v10  ;;  %v899_v11 = vld [vmem:[%s1948_s20 + $0xc0] sm:$0xff]  ;;  %v973_v49 = vmul.f32 %v903_v42, %v903_v42  ;;  %v974_v52 = vmul.f32 %v904_v46, %v904_v46  ;;  %v906_v56 = vld [vmem:[%s1948_s20 + $0xf8] sm:$0xff]  ;;  %s1251_s20 = sshll.u32 %s1702_s15, 5  ;;  %s1052_s18 = sshll.u32 %s253_s11, 4  ;;  %s2059_s18 = int_to_ptr.vmem [resolvable:$true] %s1052_s18 }
 0x1a3   : > { %v975_v53 = vmul.f32 %v905_v47, %v905_v47  ;;  %v976_v61 = vmul.f32 %v906_v56, %v906_v56  ;;  %s2057_s8 = scalar_lea.hbm %s2109_s3, %s1251_s20  ;;  %s1620_s19 = scalar_lea.vmem %s2059_s18, 32 }
 0x1a4   : > { %v926_v18 = vadd.f32 %v1966_v25, %v925_v15  ;;  %v995_v19 = vadd.f32 %v994_v16, %v964_v14  ;;  %v969_v25 = vmul.f32 %v899_v11, %v899_v11  ;;  %p1621_p12 = scmp.ne.s32.totalorder %s2059_s18, %s1620_s19  ;;  %s1721_s15 = smov [#allocation8]  }
 0x1a5   : > { %s1624_s25 = sshll.u32 %s1721_s15, 4  ;;  %s1625_s25 = int_to_ptr.vmem [resolvable:$false] %s1624_s25 }
 0x1a6   : > { %v927_v21 = vadd.f32 %v926_v18, %v896_v17  ;;  %v996_v22 = vadd.f32 %v995_v19, %v965_v59  ;;  %p1622_p11 = pnand %p1621_p12, %p1838_p10  ;;  %s1626_s29 = scalar_lea.vmem %s1625_s25, 64 }
 0x1a7   : > { %p1627_p5 = scmp.lt.s32.totalorder %s2059_s18, %s1625_s25  ;;  %p1628_p9 = scmp.lt.s32.totalorder %s1626_s29, %s1620_s19 }
 0x1a8   : > { %v928_v24 = vadd.f32 %v927_v21, %v897_v20  ;;  %v997_v27 = vadd.f32 %v996_v22, %v966_v7  ;;  %p1623_p0 = pneg %p1622_p11 }
 0x1a9   : > { %p1629_p1 = por %p1628_p9, %p1627_p5 }
 0x1aa   : > { %v929_v28 = vadd.f32 %v928_v24, %v898_v23  ;;  %v998_v30 = vadd.f32 %v997_v27, %v967_v26 }
 0x1ab   : > { %p1630_p2 = pnand %p1629_p1, %p1623_p0 }
 0x1ac   : > { %v930_v32 = vadd.f32 %v929_v28, %v899_v11  ;;  %v999_v33 = vadd.f32 %v998_v30, %v968_v29 }
 0x1ae   : > { %v931_v35 = vadd.f32 %v930_v32, %v900_v31  ;;  %v1000_v37 = vadd.f32 %v999_v33, %v969_v25 }
 0x1b0   : > { %v932_v39 = vadd.f32 %v931_v35, %v901_v34  ;;  %v1001_v41 = vadd.f32 %v1000_v37, %v970_v36 }
 0x1b2   : > { %v933_v43 = vadd.f32 %v932_v39, %v902_v38  ;;  %v1002_v45 = vadd.f32 %v1001_v41, %v971_v40 }
 0x1b4   : > { %v934_v48 = vadd.f32 %v933_v43, %v903_v42  ;;  %v1003_v50 = vadd.f32 %v1002_v45, %v972_v44 }
 0x1b6   : > { %v935_v51 = vadd.f32 %v934_v48, %v904_v46  ;;  %v1004_v54 = vadd.f32 %v1003_v50, %v973_v49 }
 0x1b8   : > { %v936_v57 = vadd.f32 %v935_v51, %v905_v47  ;;  %v1005_v58 = vadd.f32 %v1004_v54, %v974_v52 }
 0x1ba   : > { %v937_v60 = vadd.f32 %v936_v57, %v906_v56  ;;  %v1006_v62 = vadd.f32 %v1005_v58, %v975_v53 }
 0x1bc   : > { %v938_v63 = vrot.slane %v937_v60, 4  ;;  %v1007_v0 = vadd.f32 %v1006_v62, %v976_v61 }
 0x1be   : > { %v939_v1 = vadd.f32 %v938_v63, %v937_v60  ;;  %v1008_v2 = vrot.slane %v1007_v0, 4 }
 0x1c0   : > { %v940_v3 = vrot.slane %v939_v1, 2  ;;  %v1009_v4 = vadd.f32 %v1008_v2, %v1007_v0 }
 0x1c2   : > { %v941_v5 = vadd.f32 %v940_v3, %v939_v1  ;;  %v1010_v6 = vrot.slane %v1009_v4, 2 }
 0x1c4   : > { %v942_v55 = vrot.slane %v941_v5, 1  ;;  %v1011_v8 = vadd.f32 %v1010_v6, %v1009_v4 }
 0x1c6   : > { %v943_v9 = vadd.f32 %v942_v55, %v941_v5  ;;  %v1012_v10 = vrot.slane %v1011_v8, 1 }
 0x1c8   : > { %944 = vst [vmem:[%s253_s11] sm:$0x1] %v943_v9  ;;  %v1013_v12 = vadd.f32 %v1012_v10, %v1011_v8 }
 0x1ca   : > { %1014 = vst [vmem:[%s253_s11 + $0x1] sm:$0x1] %v1013_v12 }
 0x1cb   : > { %1633 = shalt.err (!%p1630_p2)
}
 0x1cc   : > { %s1634_s27 = scalar_lea.hbm %s2057_s8, 32  ;;  %s1638_s22 = scalar_lea.hbm %s2109_s3, 64 }
 0x1cd   : > { %p1635_p3 = scmp.ne.s32.totalorder %s2057_s8, %s1634_s27  ;;  %p1639_p4 = scmp.lt.u32.totalorder %s2057_s8, %s2109_s3 }
 0x1ce   : > { %p1640_p6 = scmp.lt.u32.totalorder %s1638_s22, %s1634_s27  ;;  %p1642_p12 = scmp.lt.u32.totalorder %s1634_s27, %s2057_s8 }
 0x1cf   : > { %p1636_p7 = pnand %p1635_p3, %p1838_p10 }
 0x1d0   : > { %p1641_p8 = por %p1640_p6, %p1639_p4 }
 0x1d1   : > { %p1637_p13 = pneg %p1636_p7 }
 0x1d2   : > { %p1643_p11 = por %p1642_p12, %p1641_p8 }
 0x1d4   : > { %p1644_p0 = pnand %p1643_p11, %p1637_p13 }
 0x1d6   : > { %1647 = shalt.err (!%p1644_p0)
}
 0x1d7   : > { %1392 = dma.vmem_to_hbm [thread:$0]  (%p1838_p10), %s2059_s18, 32, %s2057_s8, %s1021_s21  }
 0x1d8 PF: > { %s1064_s24 = sand.u32 1, %s1690_s12   ;;  %p2127_p5 = scmp.ne.s32.totalorder %s2117_s23, 0 }
 0x1d9   : > { %p2128_p9 = scmp.ge.s32.totalorder %s1710_s17, 2  ;;  %s1065_s20 = scalar_lea.sflag [#allocation4], %s1064_s24 }
 0x1db   : > { %p1404_p1 = pnand %p2128_p9, %p2127_p5 }
 0x1dd   : > { %1681 = dma.done.wait (!%p1404_p1), %s1065_s20, 4096  }
 0x1de   : > { %1683 = vsyncadd (!%p1404_p1), %s1065_s20, 4294963200  ;;  %s1074_s11 = scalar_lea.sflag [#allocation9], %s1064_s24 }
 0x1df   : > { %1685 = dma.done.wait (!%p1404_p1), %s1074_s11, 32  }
 0x1e0   : > { %1687 = vsyncadd (!%p1404_p1), %s1074_s11, 4294967264  ;;  %s24_s17 = sadd.s32 1, %s1710_s17   ;;  %s2129_s12 = smov %s1694_s13 }
 0x1e1   : > { %p21_p2 = scmp.ge.s32.totalorder %s24_s17, 4   ;;  %s2130_s13 = smov %s1698_s14 }
 0x1e2   : > { %s2131_s14 = smov %s1847_s5  ;;  %s2132_s15 = smov %s1706_s16 }
 0x1e3   : > { %s2133_s16 = smov %s2135_s28  ;;  %23 = sbr.rel (!%p21_p2) target bundleno = 9 (0x9), region = 103 }
 0x1ea   :  { %1079 = vsyncpa [#allocation3], 1 }
 0x1eb   :  { %1081 = vsyncpa [#allocation3 + $0x1], 1 }
 0x1ec   :  { %1082 = vsyncpa [#allocation6], 1 }
 0x1ed   :  { %1083 = vsyncpa [#allocation4], 1 }
 0x1ee   :  { %1085 = vsyncpa [#allocation4 + $0x1], 1 }
 0x1ef   :  { %1086 = vsyncpa [#allocation9], 1 }
 0x1f0   :  { %1088 = vsyncpa [#allocation9 + $0x1], 1 }

</bundles_post_ra>
